<compile_context>
chip_gen: v7x
topology: tpu7x:2x2x1
jax: 0.10.0
libtpu: 0.0.40
codegen_flags: <defaults>
</compile_context>

<pallas_src>
import functools

import jax
import jax.numpy as jnp
import numpy as np
from jax import lax
from jax.experimental import pallas as pl
from jax.experimental.pallas import tpu as pltpu


def _round_up(x, m):
    return (x + m - 1) // m * m


def _rnn_core_kernel(u_ref,        # (Tc, Bp, Hp)  pre-projected layer-0 input (incl. b1), time-major
                     w1_hh_ref,    # (Hp, Hp)      layer-0 recurrent weight (h @ W form)
                     w2_ref,       # (2*Hp, Hp)    stacked [W2_ih ; W2_hh]
                     b2_ref,       # (1, Hp)       layer-1 bias (b_ih + b_hh)
                     h2_out_ref,   # (Tc, Bp, Hp)  layer-1 hidden states (RNN output)
                     hcat_ref):    # (Bp, 2*Hp)    persistent scratch: lanes [:Hp]=h1, [Hp:]=h2
    c = pl.program_id(0)

    @pl.when(c == 0)
    def _init():
        hcat_ref[...] = jnp.zeros_like(hcat_ref)

    tc = u_ref.shape[0]
    hp = w1_hh_ref.shape[0]

    def step(i, carry):
        # layer 0: h1 = tanh(u_t + h1_prev @ W1_hh)  (input projection hoisted out)
        h1_new = jnp.tanh(
            u_ref[i]
            + jnp.dot(hcat_ref[:, :hp], w1_hh_ref[...],
                      preferred_element_type=jnp.float32))
        hcat_ref[:, :hp] = h1_new
        # layer 1 (fused ih/hh matmul): [h1_new | h2_prev] @ [W2_ih ; W2_hh] + b2
        h2_new = jnp.tanh(
            jnp.dot(hcat_ref[...], w2_ref[...],
                    preferred_element_type=jnp.float32)
            + b2_ref[...])
        hcat_ref[:, hp:] = h2_new
        h2_out_ref[i] = h2_new
        return carry

    # unrolled so the LLO scheduler can interleave the two matmul chains across steps
    lax.fori_loop(0, tc, step, 0, unroll=True)


@functools.partial(jax.jit, static_argnames=("time_chunk",))
def rnn_forward(x_btE, params, *, time_chunk=8):
    """x_btE: (B, T, E) float32.  Returns (B*T, O) — same as the PyTorch module."""
    B, T, E = x_btE.shape
    H = params["w1_hh"].shape[0]
    O = params["wfc"].shape[1]

    # padded sizes: lane-dense H, sublane-aligned B, time padded to chunk multiple
    Hp = _round_up(H, 128)
    Bp = _round_up(B, 8)
    Tc = min(time_chunk, T)
    Tp = _round_up(T, Tc)

    # ---- hoisted layer-0 input projection: one big (T*B, E)@(E, H) matmul ----
    # computed directly in time-major layout (T, B, H) for clean per-step slicing
    u = jnp.einsum("bte,eh->tbh", x_btE, params["w1_ih"]) + params["b1"]
    u_p = jnp.zeros((Tp, Bp, Hp), jnp.float32).at[:T, :B, :H].set(u)

    # ---- pad / pack weights (zero-padded lanes keep the math exact) ----
    w1_hh_p = jnp.zeros((Hp, Hp), jnp.float32).at[:H, :H].set(params["w1_hh"])
    w2_p = (jnp.zeros((2 * Hp, Hp), jnp.float32)
            .at[:H, :H].set(params["w2_ih"])
            .at[Hp:Hp + H, :H].set(params["w2_hh"]))
    b2_p = jnp.zeros((1, Hp), jnp.float32).at[:, :H].set(params["b2"])

    num_chunks = Tp // Tc

    h2_tm = pl.pallas_call(
        _rnn_core_kernel,
        out_shape=jax.ShapeDtypeStruct((Tp, Bp, Hp), jnp.float32),
        grid_spec=pltpu.PrefetchScalarGridSpec(
            num_scalar_prefetch=0,
            grid=(num_chunks,),
            in_specs=[
                pl.BlockSpec((Tc, Bp, Hp), lambda c: (c, 0, 0)),   # U chunk
                pl.BlockSpec((Hp, Hp), lambda c: (0, 0)),          # W1_hh (resident)
                pl.BlockSpec((2 * Hp, Hp), lambda c: (0, 0)),      # [W2_ih; W2_hh]
                pl.BlockSpec((1, Hp), lambda c: (0, 0)),           # b2
            ],
            out_specs=pl.BlockSpec((Tc, Bp, Hp), lambda c: (c, 0, 0)),
            scratch_shapes=[
                pltpu.VMEM((Bp, 2 * Hp), jnp.float32),             # [h1 | h2] state
            ],
        ),
        compiler_params=pltpu.CompilerParams(
            # recurrence across chunks: time axis must stay sequential
            dimension_semantics=("arbitrary",)),
    )(u_p, w1_hh_p, w2_p, b2_p)

    # drop padding, then hoisted FC: one big (T*B, H)@(H, O) matmul,
    # emitted directly in batch-major order to match rnn_out.view(-1, H).
    h2 = h2_tm[:T, :B, :H]                                          # (T, B, H)
    logits = jnp.einsum("tbh,ho->bto", h2, params["wfc"]) + params["bfc"]
    return logits.reshape(B * T, O)


def init_params(key, E, H, O):
    """Deterministic init mimicking PyTorch's U(-1/sqrt(H), 1/sqrt(H))."""
    ks = jax.random.split(key, 12)
    s = 1.0 / np.sqrt(H)
    u = lambda k, shape: jax.random.uniform(k, shape, jnp.float32, -s, s)
    # matrices stored transposed (x @ W form); b_ih + b_hh combined per layer
    return {
        "w1_ih": u(ks[0], (E, H)),
        "w1_hh": u(ks[1], (H, H)),
        "b1":    (u(ks[2], (1, H)) + u(ks[3], (1, H))),
        "w2_ih": u(ks[4], (H, H)),
        "w2_hh": u(ks[5], (H, H)),
        "b2":    (u(ks[6], (1, H)) + u(ks[7], (1, H))),
        "wfc":   u(ks[8], (H, O)),
        "bfc":   u(ks[9], (1, O)),
    }


def reference_forward(x, p):
    """Pure-JAX reference (same math as torch nn.RNN(tanh, 2 layers) + Linear)."""
    B, T, E = x.shape
    H = p["w1_hh"].shape[0]
    h1 = jnp.zeros((B, H), jnp.float32)
    h2 = jnp.zeros((B, H), jnp.float32)
    outs = []
    for t in range(T):
        xt = x[:, t, :]
        h1 = jnp.tanh(xt @ p["w1_ih"] + h1 @ p["w1_hh"] + p["b1"])
        h2 = jnp.tanh(h1 @ p["w2_ih"] + h2 @ p["w2_hh"] + p["b2"])
        outs.append(h2)
    rnn_out = jnp.stack(outs, axis=1)                      # (B, T, H)
    return rnn_out.reshape(-1, H) @ p["wfc"] + p["bfc"]    # (B*T, O)


if __name__ == "__main__":
    # small shapes consistent with the module (embedding_dim, hidden_dim, output_dim)
    B, T, E, H, O = 2, 8, 32, 32, 4
    key = jax.random.PRNGKey(0)
    kx, kp = jax.random.split(key)
    x = jax.random.normal(kx, (B, T, E), jnp.float32)
    params = init_params(kp, E, H, O)

    out = rnn_forward(x, params, time_chunk=4)   # 2 time chunks -> exercises state carry
    out = jax.block_until_ready(out)

    ref = reference_forward(x, params)
    np.testing.assert_allclose(np.asarray(out), np.asarray(ref), rtol=1e-5, atol=1e-5)
    assert out.shape == (B * T, O)
    print("KERNEL_OK")
</pallas_src>

<mosaic_0001>
module attributes {stable_mosaic.version = 11 : i64} {
  func.func @_rnn_core_kernel(%arg0: i32, %arg1: memref<4x8x128xf32, #tpu.memory_space<vmem>>, %arg2: memref<128x128xf32, #tpu.memory_space<vmem>>, %arg3: memref<256x128xf32, #tpu.memory_space<vmem>>, %arg4: memref<1x128xf32, #tpu.memory_space<vmem>>, %arg5: memref<4x8x128xf32, #tpu.memory_space<vmem>>, %arg6: memref<8x256xf32, #tpu.memory_space<vmem>>) attributes {dimension_semantics = [#tpu.dimension_semantics<arbitrary>], iteration_bounds = array<i64: 2>, scalar_prefetch = 0 : i64, scratch_operands = 1 : i64, tpu.core_type = #tpu.core_type<tc>, window_params = [{transform_indices = @transform_0, window_bounds = array<i64: 4, 8, 128>}, {pipeline_mode = #tpu.pipeline_mode<synchronous>, transform_indices = @transform_1, window_bounds = array<i64: 128, 128>}, {pipeline_mode = #tpu.pipeline_mode<synchronous>, transform_indices = @transform_2, window_bounds = array<i64: 256, 128>}, {pipeline_mode = #tpu.pipeline_mode<synchronous>, transform_indices = @transform_3, window_bounds = array<i64: 1, 128>}, {transform_indices = @transform_4, window_bounds = array<i64: 4, 8, 128>}]} {
    %c0_i32 = arith.constant 0 : i32
    %0 = arith.cmpi eq, %arg0, %c0_i32 : i32
    %1 = arith.extui %0 : i1 to i32
    %c0_i32_0 = arith.constant 0 : i32
    %2 = arith.cmpi ne, %1, %c0_i32_0 : i32
    scf.if %2 {
      %cst_79 = arith.constant 0.000000e+00 : f32
      %87 = vector.broadcast %cst_79 : f32 to vector<8x256xf32>
      %c0_80 = arith.constant 0 : index
      %c0_81 = arith.constant 0 : index
      %88 = vector.load %arg6[%c0_80, %c0_81] : memref<8x256xf32, #tpu.memory_space<vmem>>, vector<8x256xf32>
      tpu.vector_store %arg6[%c0_80, %c0_81], %87 {strides = array<i32>} : memref<8x256xf32, #tpu.memory_space<vmem>>, vector<8x256xf32>,
    } else {
    }
    %c0_i32_1 = arith.constant 0 : i32
    %3 = arith.index_cast %c0_i32_1 : i32 to index
    %c0 = arith.constant 0 : index
    %c0_2 = arith.constant 0 : index
    %4 = vector.load %arg1[%3, %c0, %c0_2] : memref<4x8x128xf32, #tpu.memory_space<vmem>>, vector<1x8x128xf32>
    %5 = vector.shape_cast %4 : vector<1x8x128xf32> to vector<8x128xf32>
    %c0_3 = arith.constant 0 : index
    %c0_4 = arith.constant 0 : index
    %6 = vector.load %arg6[%c0_3, %c0_4] : memref<8x256xf32, #tpu.memory_space<vmem>>, vector<8x128xf32>
    %c0_5 = arith.constant 0 : index
    %c0_6 = arith.constant 0 : index
    %7 = vector.load %arg2[%c0_5, %c0_6] : memref<128x128xf32, #tpu.memory_space<vmem>>, vector<128x128xf32>
    %cst = arith.constant dense<0.000000e+00> : vector<8x128xf32>
    %8 = tpu.matmul %6, %7, %cst {dimension_numbers = #tpu.dot_dimension_numbers<[1], [0], [0], [1], [0, 0, 1, 1], [], []>} : vector<8x128xf32>, vector<128x128xf32>, vector<8x128xf32> -> vector<8x128xf32>
    %9 = arith.addf %5, %8 : vector<8x128xf32>
    %10 = math.tanh %9 : vector<8x128xf32>
    %c0_7 = arith.constant 0 : index
    %c0_8 = arith.constant 0 : index
    %11 = vector.load %arg6[%c0_7, %c0_8] : memref<8x256xf32, #tpu.memory_space<vmem>>, vector<8x128xf32>
    tpu.vector_store %arg6[%c0_7, %c0_8], %10 {strides = array<i32>} : memref<8x256xf32, #tpu.memory_space<vmem>>, vector<8x128xf32>,
    %c0_9 = arith.constant 0 : index
    %c0_10 = arith.constant 0 : index
    %12 = vector.load %arg6[%c0_9, %c0_10] : memref<8x256xf32, #tpu.memory_space<vmem>>, vector<8x256xf32>
    %c0_11 = arith.constant 0 : index
    %c0_12 = arith.constant 0 : index
    %13 = vector.load %arg3[%c0_11, %c0_12] : memref<256x128xf32, #tpu.memory_space<vmem>>, vector<256x128xf32>
    %cst_13 = arith.constant dense<0.000000e+00> : vector<8x128xf32>
    %14 = tpu.matmul %12, %13, %cst_13 {dimension_numbers = #tpu.dot_dimension_numbers<[1], [0], [0], [1], [0, 0, 1, 1], [], []>} : vector<8x256xf32>, vector<256x128xf32>, vector<8x128xf32> -> vector<8x128xf32>
    %c0_14 = arith.constant 0 : index
    %c0_15 = arith.constant 0 : index
    %15 = vector.load %arg4[%c0_14, %c0_15] : memref<1x128xf32, #tpu.memory_space<vmem>>, vector<1x128xf32>
    %16 = vector.broadcast %15 : vector<1x128xf32> to vector<8x128xf32>
    %17 = arith.addf %14, %16 : vector<8x128xf32>
    %18 = math.tanh %17 : vector<8x128xf32>
    %c0_16 = arith.constant 0 : index
    %c128 = arith.constant 128 : index
    %19 = vector.load %arg6[%c0_16, %c128] : memref<8x256xf32, #tpu.memory_space<vmem>>, vector<8x128xf32>
    tpu.vector_store %arg6[%c0_16, %c128], %18 {strides = array<i32>} : memref<8x256xf32, #tpu.memory_space<vmem>>, vector<8x128xf32>,
    %20 = arith.index_cast %c0_i32_1 : i32 to index
    %c0_17 = arith.constant 0 : index
    %c0_18 = arith.constant 0 : index
    %21 = vector.load %arg5[%20, %c0_17, %c0_18] : memref<4x8x128xf32, #tpu.memory_space<vmem>>, vector<1x8x128xf32>
    %22 = vector.shape_cast %21 : vector<1x8x128xf32> to vector<8x128xf32>
    %23 = vector.shape_cast %18 : vector<8x128xf32> to vector<1x8x128xf32>
    tpu.vector_store %arg5[%20, %c0_17, %c0_18], %23 {strides = array<i32>} : memref<4x8x128xf32, #tpu.memory_space<vmem>>, vector<1x8x128xf32>,
    %c1_i32 = arith.constant 1 : i32
    %24 = arith.index_cast %c1_i32 : i32 to index
    %c0_19 = arith.constant 0 : index
    %c0_20 = arith.constant 0 : index
    %25 = vector.load %arg1[%24, %c0_19, %c0_20] : memref<4x8x128xf32, #tpu.memory_space<vmem>>, vector<1x8x128xf32>
    %26 = vector.shape_cast %25 : vector<1x8x128xf32> to vector<8x128xf32>
    %c0_21 = arith.constant 0 : index
    %c0_22 = arith.constant 0 : index
    %27 = vector.load %arg6[%c0_21, %c0_22] : memref<8x256xf32, #tpu.memory_space<vmem>>, vector<8x128xf32>
    %c0_23 = arith.constant 0 : index
    %c0_24 = arith.constant 0 : index
    %28 = vector.load %arg2[%c0_23, %c0_24] : memref<128x128xf32, #tpu.memory_space<vmem>>, vector<128x128xf32>
    %cst_25 = arith.constant dense<0.000000e+00> : vector<8x128xf32>
    %29 = tpu.matmul %27, %28, %cst_25 {dimension_numbers = #tpu.dot_dimension_numbers<[1], [0], [0], [1], [0, 0, 1, 1], [], []>} : vector<8x128xf32>, vector<128x128xf32>, vector<8x128xf32> -> vector<8x128xf32>
    %30 = arith.addf %26, %29 : vector<8x128xf32>
    %31 = math.tanh %30 : vector<8x128xf32>
    %c0_26 = arith.constant 0 : index
    %c0_27 = arith.constant 0 : index
    %32 = vector.load %arg6[%c0_26, %c0_27] : memref<8x256xf32, #tpu.memory_space<vmem>>, vector<8x128xf32>
    tpu.vector_store %arg6[%c0_26, %c0_27], %31 {strides = array<i32>} : memref<8x256xf32, #tpu.memory_space<vmem>>, vector<8x128xf32>,
    %c0_28 = arith.constant 0 : index
    %c0_29 = arith.constant 0 : index
    %33 = vector.load %arg6[%c0_28, %c0_29] : memref<8x256xf32, #tpu.memory_space<vmem>>, vector<8x256xf32>
    %c0_30 = arith.constant 0 : index
    %c0_31 = arith.constant 0 : index
    %34 = vector.load %arg3[%c0_30, %c0_31] : memref<256x128xf32, #tpu.memory_space<vmem>>, vector<256x128xf32>
    %cst_32 = arith.constant dense<0.000000e+00> : vector<8x128xf32>
    %35 = tpu.matmul %33, %34, %cst_32 {dimension_numbers = #tpu.dot_dimension_numbers<[1], [0], [0], [1], [0, 0, 1, 1], [], []>} : vector<8x256xf32>, vector<256x128xf32>, vector<8x128xf32> -> vector<8x128xf32>
    %c0_33 = arith.constant 0 : index
    %c0_34 = arith.constant 0 : index
    %36 = vector.load %arg4[%c0_33, %c0_34] : memref<1x128xf32, #tpu.memory_space<vmem>>, vector<1x128xf32>
    %37 = vector.broadcast %36 : vector<1x128xf32> to vector<8x128xf32>
    %38 = arith.addf %35, %37 : vector<8x128xf32>
    %39 = math.tanh %38 : vector<8x128xf32>
    %c0_35 = arith.constant 0 : index
    %c128_36 = arith.constant 128 : index
    %40 = vector.load %arg6[%c0_35, %c128_36] : memref<8x256xf32, #tpu.memory_space<vmem>>, vector<8x128xf32>
    tpu.vector_store %arg6[%c0_35, %c128_36], %39 {strides = array<i32>} : memref<8x256xf32, #tpu.memory_space<vmem>>, vector<8x128xf32>,
    %41 = arith.index_cast %c1_i32 : i32 to index
    %c0_37 = arith.constant 0 : index
    %c0_38 = arith.constant 0 : index
    %42 = vector.load %arg5[%41, %c0_37, %c0_38] : memref<4x8x128xf32, #tpu.memory_space<vmem>>, vector<1x8x128xf32>
    %43 = vector.shape_cast %42 : vector<1x8x128xf32> to vector<8x128xf32>
    %44 = vector.shape_cast %39 : vector<8x128xf32> to vector<1x8x128xf32>
    tpu.vector_store %arg5[%41, %c0_37, %c0_38], %44 {strides = array<i32>} : memref<4x8x128xf32, #tpu.memory_space<vmem>>, vector<1x8x128xf32>,
    %c2_i32 = arith.constant 2 : i32
    %45 = arith.index_cast %c2_i32 : i32 to index
    %c0_39 = arith.constant 0 : index
    %c0_40 = arith.constant 0 : index
    %46 = vector.load %arg1[%45, %c0_39, %c0_40] : memref<4x8x128xf32, #tpu.memory_space<vmem>>, vector<1x8x128xf32>
    %47 = vector.shape_cast %46 : vector<1x8x128xf32> to vector<8x128xf32>
    %c0_41 = arith.constant 0 : index
    %c0_42 = arith.constant 0 : index
    %48 = vector.load %arg6[%c0_41, %c0_42] : memref<8x256xf32, #tpu.memory_space<vmem>>, vector<8x128xf32>
    %c0_43 = arith.constant 0 : index
    %c0_44 = arith.constant 0 : index
    %49 = vector.load %arg2[%c0_43, %c0_44] : memref<128x128xf32, #tpu.memory_space<vmem>>, vector<128x128xf32>
    %cst_45 = arith.constant dense<0.000000e+00> : vector<8x128xf32>
    %50 = tpu.matmul %48, %49, %cst_45 {dimension_numbers = #tpu.dot_dimension_numbers<[1], [0], [0], [1], [0, 0, 1, 1], [], []>} : vector<8x128xf32>, vector<128x128xf32>, vector<8x128xf32> -> vector<8x128xf32>
    %51 = arith.addf %47, %50 : vector<8x128xf32>
    %52 = math.tanh %51 : vector<8x128xf32>
    %c0_46 = arith.constant 0 : index
    %c0_47 = arith.constant 0 : index
    %53 = vector.load %arg6[%c0_46, %c0_47] : memref<8x256xf32, #tpu.memory_space<vmem>>, vector<8x128xf32>
    tpu.vector_store %arg6[%c0_46, %c0_47], %52 {strides = array<i32>} : memref<8x256xf32, #tpu.memory_space<vmem>>, vector<8x128xf32>,
    %c0_48 = arith.constant 0 : index
    %c0_49 = arith.constant 0 : index
    %54 = vector.load %arg6[%c0_48, %c0_49] : memref<8x256xf32, #tpu.memory_space<vmem>>, vector<8x256xf32>
    %c0_50 = arith.constant 0 : index
    %c0_51 = arith.constant 0 : index
    %55 = vector.load %arg3[%c0_50, %c0_51] : memref<256x128xf32, #tpu.memory_space<vmem>>, vector<256x128xf32>
    %cst_52 = arith.constant dense<0.000000e+00> : vector<8x128xf32>
    %56 = tpu.matmul %54, %55, %cst_52 {dimension_numbers = #tpu.dot_dimension_numbers<[1], [0], [0], [1], [0, 0, 1, 1], [], []>} : vector<8x256xf32>, vector<256x128xf32>, vector<8x128xf32> -> vector<8x128xf32>
    %c0_53 = arith.constant 0 : index
    %c0_54 = arith.constant 0 : index
    %57 = vector.load %arg4[%c0_53, %c0_54] : memref<1x128xf32, #tpu.memory_space<vmem>>, vector<1x128xf32>
    %58 = vector.broadcast %57 : vector<1x128xf32> to vector<8x128xf32>
    %59 = arith.addf %56, %58 : vector<8x128xf32>
    %60 = math.tanh %59 : vector<8x128xf32>
    %c0_55 = arith.constant 0 : index
    %c128_56 = arith.constant 128 : index
    %61 = vector.load %arg6[%c0_55, %c128_56] : memref<8x256xf32, #tpu.memory_space<vmem>>, vector<8x128xf32>
    tpu.vector_store %arg6[%c0_55, %c128_56], %60 {strides = array<i32>} : memref<8x256xf32, #tpu.memory_space<vmem>>, vector<8x128xf32>,
    %62 = arith.index_cast %c2_i32 : i32 to index
    %c0_57 = arith.constant 0 : index
    %c0_58 = arith.constant 0 : index
    %63 = vector.load %arg5[%62, %c0_57, %c0_58] : memref<4x8x128xf32, #tpu.memory_space<vmem>>, vector<1x8x128xf32>
    %64 = vector.shape_cast %63 : vector<1x8x128xf32> to vector<8x128xf32>
    %65 = vector.shape_cast %60 : vector<8x128xf32> to vector<1x8x128xf32>
    tpu.vector_store %arg5[%62, %c0_57, %c0_58], %65 {strides = array<i32>} : memref<4x8x128xf32, #tpu.memory_space<vmem>>, vector<1x8x128xf32>,
    %c3_i32 = arith.constant 3 : i32
    %66 = arith.index_cast %c3_i32 : i32 to index
    %c0_59 = arith.constant 0 : index
    %c0_60 = arith.constant 0 : index
    %67 = vector.load %arg1[%66, %c0_59, %c0_60] : memref<4x8x128xf32, #tpu.memory_space<vmem>>, vector<1x8x128xf32>
    %68 = vector.shape_cast %67 : vector<1x8x128xf32> to vector<8x128xf32>
    %c0_61 = arith.constant 0 : index
    %c0_62 = arith.constant 0 : index
    %69 = vector.load %arg6[%c0_61, %c0_62] : memref<8x256xf32, #tpu.memory_space<vmem>>, vector<8x128xf32>
    %c0_63 = arith.constant 0 : index
    %c0_64 = arith.constant 0 : index
    %70 = vector.load %arg2[%c0_63, %c0_64] : memref<128x128xf32, #tpu.memory_space<vmem>>, vector<128x128xf32>
    %cst_65 = arith.constant dense<0.000000e+00> : vector<8x128xf32>
    %71 = tpu.matmul %69, %70, %cst_65 {dimension_numbers = #tpu.dot_dimension_numbers<[1], [0], [0], [1], [0, 0, 1, 1], [], []>} : vector<8x128xf32>, vector<128x128xf32>, vector<8x128xf32> -> vector<8x128xf32>
    %72 = arith.addf %68, %71 : vector<8x128xf32>
    %73 = math.tanh %72 : vector<8x128xf32>
    %c0_66 = arith.constant 0 : index
    %c0_67 = arith.constant 0 : index
    %74 = vector.load %arg6[%c0_66, %c0_67] : memref<8x256xf32, #tpu.memory_space<vmem>>, vector<8x128xf32>
    tpu.vector_store %arg6[%c0_66, %c0_67], %73 {strides = array<i32>} : memref<8x256xf32, #tpu.memory_space<vmem>>, vector<8x128xf32>,
    %c0_68 = arith.constant 0 : index
    %c0_69 = arith.constant 0 : index
    %75 = vector.load %arg6[%c0_68, %c0_69] : memref<8x256xf32, #tpu.memory_space<vmem>>, vector<8x256xf32>
    %c0_70 = arith.constant 0 : index
    %c0_71 = arith.constant 0 : index
    %76 = vector.load %arg3[%c0_70, %c0_71] : memref<256x128xf32, #tpu.memory_space<vmem>>, vector<256x128xf32>
    %cst_72 = arith.constant dense<0.000000e+00> : vector<8x128xf32>
    %77 = tpu.matmul %75, %76, %cst_72 {dimension_numbers = #tpu.dot_dimension_numbers<[1], [0], [0], [1], [0, 0, 1, 1], [], []>} : vector<8x256xf32>, vector<256x128xf32>, vector<8x128xf32> -> vector<8x128xf32>
    %c0_73 = arith.constant 0 : index
    %c0_74 = arith.constant 0 : index
    %78 = vector.load %arg4[%c0_73, %c0_74] : memref<1x128xf32, #tpu.memory_space<vmem>>, vector<1x128xf32>
    %79 = vector.broadcast %78 : vector<1x128xf32> to vector<8x128xf32>
    %80 = arith.addf %77, %79 : vector<8x128xf32>
    %81 = math.tanh %80 : vector<8x128xf32>
    %c0_75 = arith.constant 0 : index
    %c128_76 = arith.constant 128 : index
    %82 = vector.load %arg6[%c0_75, %c128_76] : memref<8x256xf32, #tpu.memory_space<vmem>>, vector<8x128xf32>
    tpu.vector_store %arg6[%c0_75, %c128_76], %81 {strides = array<i32>} : memref<8x256xf32, #tpu.memory_space<vmem>>, vector<8x128xf32>,
    %83 = arith.index_cast %c3_i32 : i32 to index
    %c0_77 = arith.constant 0 : index
    %c0_78 = arith.constant 0 : index
    %84 = vector.load %arg5[%83, %c0_77, %c0_78] : memref<4x8x128xf32, #tpu.memory_space<vmem>>, vector<1x8x128xf32>
    %85 = vector.shape_cast %84 : vector<1x8x128xf32> to vector<8x128xf32>
    %86 = vector.shape_cast %81 : vector<8x128xf32> to vector<1x8x128xf32>
    tpu.vector_store %arg5[%83, %c0_77, %c0_78], %86 {strides = array<i32>} : memref<4x8x128xf32, #tpu.memory_space<vmem>>, vector<1x8x128xf32>,
    %c4_i32 = arith.constant 4 : i32
    return
  }
  func.func @transform_0(%arg0: i32) -> (i32, i32, i32) {
    %c0_i32 = arith.constant 0 : i32
    %c0_i32_0 = arith.constant 0 : i32
    %c0_i32_1 = arith.constant 0 : i32
    return %arg0, %c0_i32, %c0_i32_0 : i32, i32, i32
  }
  func.func @transform_1(%arg0: i32) -> (i32, i32) {
    %c0_i32 = arith.constant 0 : i32
    %c0_i32_0 = arith.constant 0 : i32
    %c0_i32_1 = arith.constant 0 : i32
    return %c0_i32, %c0_i32_0 : i32, i32
  }
  func.func @transform_2(%arg0: i32) -> (i32, i32) {
    %c0_i32 = arith.constant 0 : i32
    %c0_i32_0 = arith.constant 0 : i32
    %c0_i32_1 = arith.constant 0 : i32
    return %c0_i32, %c0_i32_0 : i32, i32
  }
  func.func @transform_3(%arg0: i32) -> (i32, i32) {
    %c0_i32 = arith.constant 0 : i32
    %c0_i32_0 = arith.constant 0 : i32
    %c0_i32_1 = arith.constant 0 : i32
    return %c0_i32, %c0_i32_0 : i32, i32
  }
  func.func @transform_4(%arg0: i32) -> (i32, i32, i32) {
    %c0_i32 = arith.constant 0 : i32
    %c0_i32_0 = arith.constant 0 : i32
    %c0_i32_1 = arith.constant 0 : i32
    return %arg0, %c0_i32, %c0_i32_0 : i32, i32, i32
  }
}

</mosaic_0001>

<bundles_post_ra>
// kernel: rnn_forward.1
= control target key start
LH: loop header
LB: loop body
LE: loop exit
PB: predicated region body
PF: predicated region fallthrough
CT: control target
= control target key end

     0   :  { %s1748_s15 = smov 0   ;;  %s2114_s0 = inlined_call_operand.vmem [shape: f32[8,8,128], index: 0, kind: input, shape index: {}]   ;;  %s2115_s1 = inlined_call_operand.vmem [shape: f32[128,128], index: 1, kind: input, shape index: {}]   ;;  %s2116_s2 = inlined_call_operand.vmem [shape: f32[256,128], index: 2, kind: input, shape index: {}]   ;;  %s2117_s3 = inlined_call_operand.vmem [shape: f32[1,128], index: 3, kind: input, shape index: {}]   ;;  %s2118_s4 = inlined_call_operand.vmem [shape: f32[8,8,128], index: 4, kind: output, shape index: {}]  }
   0x1 LB: > { %s1089_s16 = sadd.s32 4294967295, %s1717_s15   ;;  %p1093_p0 = scmp.ge.s32.totalorder %s1717_s15, 1  ;;  %s1717_s15 = sphi %s1748_s15, %s14_s15  }
   0x2   : > { %p163_p1 = scmp.lt.s32.totalorder %s1717_s15, 3 }
   0x4   : > { %p164_p2 = pnand %p1093_p0, %p163_p1 }
   0x5   : > { %s1094_s17 = sshll.u32 (!%p164_p2), %s1089_s16, 2  ;;  %p1098_p4 = scmp.ne.s32.totalorder (!%p164_p2), %s1089_s16, 0 }
   0x6   : > { %167 = sbr.rel (%p164_p2) target bundleno = 1195 (0x4ab), region = 36  ;;  %p190_p3 = scmp.lt.s32.totalorder (!%p164_p2), %s1094_s17, 7 }
   0xd   : > { %s2120_s17 = smov (!%p190_p3, %s1094_s17), 7  ;;  %204 = sbr.rel (%p1098_p4) target bundleno = 20 (0x14), region = 40 }
   0xe   : > { %s1095_s18 = sshll.u32 %s2120_s17, 3  ;;  %v1719_v0 = vmov (!%p1098_p4), 0.0  }
   0xf   : > { %s1759_s21 = scalar_lea.vmem %s2114_s0, %s1095_s18  ;;  %s1764_s24 = scalar_lea.vmem %s2118_s4, %s1095_s18  ;;  %205 = vst [vmem:[#allocation2] sm:$0xff] (!%p1098_p4), %v1719_v0  ;;  %206 = vst [vmem:[#allocation2 + $0x8] sm:$0xff] (!%p1098_p4), %v1719_v0 }
  0x14 PF: > { %v209_v1 = vld [vmem:[%s2115_s1] sm:$0xff]  ;;  %v210_v2 = vld [vmem:[%s2115_s1 + $0x8] sm:$0xff]  ;;  %v211_v3 = vld [vmem:[%s2115_s1 + $0x10] sm:$0xff]  ;;  %v1720_v4 = vmov 0.0|0.0   ;;  %vm1721_vm0 = vmmov 0   ;;  %v1722_v7 = vmov 0.0  }
  0x15   : > { %1459 = vmatprep.subr.bf16.mxu0 %v1720_v4  ;;  %v1776_v5 = vpack.c.bf16 %v210_v2, %v209_v1  ;;  %v212_v6 = vld [vmem:[%s2115_s1 + $0x18] sm:$0xff]  ;;  %1351 = vmatprep.mubr.msk.f32.mxu0 %vm1721_vm0, %v1722_v7  ;;  %v213_v9 = vld [vmem:[%s2115_s1 + $0x20] sm:$0xff]  ;;  %v214_v10 = vld [vmem:[%s2115_s1 + $0x28] sm:$0xff] }
  0x16   : > { %v1784_v8 = vpack.c.bf16 %v212_v6, %v211_v3  ;;  %v316_v11 = vld [vmem:[%s2116_s2 + $0x80] sm:$0xff]  ;;  %v215_v12 = vld [vmem:[%s2115_s1 + $0x30] sm:$0xff]  ;;  %v216_v13 = vld [vmem:[%s2115_s1 + $0x38] sm:$0xff]  ;;  %v1812_v17 = vpack.c.bf16 %v214_v10, %v213_v9 }
  0x17   : > { %1461 = vmatpush3.bf16.msra.mxu0 %v1776_v5  ;;  %v317_v14 = vld [vmem:[%s2116_s2 + $0x88] sm:$0xff]  ;;  %v300_v15 = vld [vmem:[%s2116_s2] sm:$0xff]  ;;  %v318_v20 = vld [vmem:[%s2116_s2 + $0x90] sm:$0xff]  ;;  %v1844_v28 = vpack.c.bf16 %v216_v13, %v215_v12 }
  0x18   : > { %1462 = vmatprep.subr.bf16.mxu0 %v1720_v4  ;;  %v301_v16 = vld [vmem:[%s2116_s2 + $0x8] sm:$0xff]  ;;  %v1814_v18 = vpack.c.bf16 %v317_v14, %v316_v11  ;;  %v319_v21 = vld [vmem:[%s2116_s2 + $0x98] sm:$0xff]  ;;  %v302_v22 = vld [vmem:[%s2116_s2 + $0x10] sm:$0xff] }
  0x19   : > { %v1816_v19 = vpack.c.bf16 %v301_v16, %v300_v15  ;;  %v1828_v23 = vpack.c.bf16 %v319_v21, %v318_v20  ;;  %v303_v24 = vld [vmem:[%s2116_s2 + $0x18] sm:$0xff]  ;;  %v320_v25 = vld [vmem:[%s2116_s2 + $0xa0] sm:$0xff]  ;;  %v321_v26 = vld [vmem:[%s2116_s2 + $0xa8] sm:$0xff] }
  0x1a   : > { %1484 = vmatprep.subr.bf16.mxu1 %v1814_v18  ;;  %v1841_v27 = vpack.c.bf16 %v303_v24, %v302_v22  ;;  %v1847_v29 = vpack.c.bf16 %v321_v26, %v320_v25  ;;  %v304_v30 = vld [vmem:[%s2116_s2 + $0x20] sm:$0xff]  ;;  %v305_v31 = vld [vmem:[%s2116_s2 + $0x28] sm:$0xff]  ;;  %v219_v36 = vld [vmem:[%s2115_s1 + $0x50] sm:$0xff] }
  0x1b   : > { %1464 = vmatpush3.bf16.msra.mxu0 %v1784_v8  ;;  %1486 = vmatpush3.bf16.msra.mxu1 %v1816_v19  ;;  %v217_v32 = vld [vmem:[%s2115_s1 + $0x40] sm:$0xff]  ;;  %v218_v33 = vld [vmem:[%s2115_s1 + $0x48] sm:$0xff]  ;;  %v1863_v34 = vpack.c.bf16 %v305_v31, %v304_v30  ;;  %v220_v37 = vld [vmem:[%s2115_s1 + $0x58] sm:$0xff] }
  0x1c   : > { %1465 = vmatprep.subr.bf16.mxu0 %v1720_v4  ;;  %1488 = vmatprep.subr.bf16.mxu1 %v1828_v23  ;;  %v1866_v35 = vpack.c.bf16 %v218_v33, %v217_v32  ;;  %v1878_v38 = vpack.c.bf16 %v220_v37, %v219_v36  ;;  %v221_v39 = vld [vmem:[%s2115_s1 + $0x60] sm:$0xff]  ;;  %v222_v40 = vld [vmem:[%s2115_s1 + $0x68] sm:$0xff]  ;;  %v223_v42 = vld [vmem:[%s2115_s1 + $0x70] sm:$0xff] }
  0x1d   : > { %v1888_v41 = vpack.c.bf16 %v222_v40, %v221_v39  ;;  %v224_v43 = vld [vmem:[%s2115_s1 + $0x78] sm:$0xff]  ;;  %v208_v45 = vld [vmem:[#allocation2] sm:$0xff]  ;;  %v322_v46 = vld [vmem:[%s2116_s2 + $0xb0] sm:$0xff] }
  0x1e   : > { %v1898_v44 = vpack.c.bf16 %v224_v43, %v223_v42  ;;  %v323_v47 = vld [vmem:[%s2116_s2 + $0xb8] sm:$0xff]  ;;  %v306_v49 = vld [vmem:[%s2116_s2 + $0x30] sm:$0xff]  ;;  %v324_v52 = vld [vmem:[%s2116_s2 + $0xc0] sm:$0xff] }
  0x1f   : > { %1467 = vmatpush3.bf16.msra.mxu0 %v1812_v17  ;;  %1490 = vmatpush3.bf16.msra.mxu1 %v1841_v27  ;;  %v1927_v48 = vpack.c.bf16 %v323_v47, %v322_v46  ;;  %v307_v50 = vld [vmem:[%s2116_s2 + $0x38] sm:$0xff]  ;;  %v325_v53 = vld [vmem:[%s2116_s2 + $0xc8] sm:$0xff]  ;;  %v308_v55 = vld [vmem:[%s2116_s2 + $0x40] sm:$0xff] }
  0x20   : > { %1468 = vmatprep.subr.bf16.mxu0 %v1720_v4  ;;  %1492 = vmatprep.subr.bf16.mxu1 %v1847_v29  ;;  %v1935_v51 = vpack.c.bf16 %v307_v50, %v306_v49  ;;  %v1945_v54 = vpack.c.bf16 %v325_v53, %v324_v52  ;;  %v309_v56 = vld [vmem:[%s2116_s2 + $0x48] sm:$0xff]  ;;  %v326_v58 = vld [vmem:[%s2116_s2 + $0xd0] sm:$0xff]  ;;  %v327_v59 = vld [vmem:[%s2116_s2 + $0xd8] sm:$0xff] }
  0x21   : > { %v1953_v57 = vpack.c.bf16 %v309_v56, %v308_v55  ;;  %v1963_v60 = vpack.c.bf16 %v327_v59, %v326_v58  ;;  %v310_v61 = vld [vmem:[%s2116_s2 + $0x50] sm:$0xff]  ;;  %v311_v62 = vld [vmem:[%s2116_s2 + $0x58] sm:$0xff]  ;;  %v328_v0 = vld [vmem:[%s2116_s2 + $0xe0] sm:$0xff] }
  0x22   : > { %v1971_v63 = vpack.c.bf16 %v311_v62, %v310_v61  ;;  %v329_v1 = vld [vmem:[%s2116_s2 + $0xe8] sm:$0xff]  ;;  %v312_v2 = vld [vmem:[%s2116_s2 + $0x60] sm:$0xff]  ;;  %v330_v9 = vld [vmem:[%s2116_s2 + $0xf0] sm:$0xff] }
  0x23   : > { %1470 = vmatpush3.bf16.msra.mxu0 %v1844_v28  ;;  %1494 = vmatpush3.bf16.msra.mxu1 %v1863_v34  ;;  %v1984_v3 = vpack.c.bf16 %v329_v1, %v328_v0  ;;  %v313_v6 = vld [vmem:[%s2116_s2 + $0x68] sm:$0xff]  ;;  %v331_v10 = vld [vmem:[%s2116_s2 + $0xf8] sm:$0xff]  ;;  %v314_v13 = vld [vmem:[%s2116_s2 + $0x70] sm:$0xff] }
  0x24   : > { %1471 = vmatprep.subr.bf16.mxu0 %v1720_v4  ;;  %1496 = vmatprep.subr.bf16.mxu1 %v1927_v48  ;;  %v1995_v11 = vpack.c.bf16 %v313_v6, %v312_v2  ;;  %v1997_v12 = vpack.c.bf16 %v331_v10, %v330_v9  ;;  %v315_v14 = vld [vmem:[%s2116_s2 + $0x78] sm:$0xff]  ;;  %v299_v15 = vld [vmem:[#allocation2 + $0x8] sm:$0xff]  ;;  %v207_v20 = vld [vmem:[%s1759_s21] sm:$0xff] }
  0x25   : > { %403 = vmatprep.mubr.f32.mxu1 %v299_v15  ;;  %v2007_v16 = vpack.c.bf16 %v315_v14, %v314_v13  ;;  %v1100_v26 = vld [vmem:[%s1759_s21 + $0x8] sm:$0xff]  ;;  %v2051_v33 = vld [vmem:[%s2117_s3] ss:$0 sm:$0xff] }
  0x27   : > { %1473 = vmatpush3.bf16.msra.mxu0 %v1866_v35  ;;  %1498 = vmatpush3.bf16.msra.mxu1 %v1935_v51 }
  0x28   : > { %1474 = vmatprep.subr.bf16.mxu0 %v1720_v4  ;;  %1500 = vmatprep.subr.bf16.mxu1 %v1945_v54 }
  0x2b   : > { %1476 = vmatpush3.bf16.msra.mxu0 %v1878_v38  ;;  %1502 = vmatpush3.bf16.msra.mxu1 %v1953_v57 }
  0x2c   : > { %1477 = vmatprep.subr.bf16.mxu0 %v1720_v4  ;;  %1504 = vmatprep.subr.bf16.mxu1 %v1963_v60 }
  0x2f   : > { %1479 = vmatpush3.bf16.msra.mxu0 %v1888_v41  ;;  %1506 = vmatpush3.bf16.msra.mxu1 %v1971_v63 }
  0x30   : > { %1480 = vmatprep.subr.bf16.mxu0 %v1720_v4  ;;  %1508 = vmatprep.subr.bf16.mxu1 %v1984_v3 }
  0x33   : > { %1482 = vmatpush3.bf16.msra.mxu0 %v1898_v44  ;;  %1510 = vmatpush3.bf16.msra.mxu1 %v1995_v11 }
  0x34   : > { %1515 = vmatprep.subr.bf16.mxu0 %v1720_v4  ;;  %1512 = vmatprep.subr.bf16.mxu1 %v1997_v12 }
  0x36   : > { %1352 = vmatmul.mubr.f32.vlgmr.msra.gmra.mrb[0].mxu0 %v208_v45 }
  0x37   : > { %1517 = vmatpush3.bf16.msra.mxu0 %v1776_v5  ;;  %1386 = vmatprep.mubr.msk.f32.mxu0 %vm1721_vm0, %v1722_v7 }
  0x38   : > { %1518 = vmatprep.subr.bf16.mxu0 %v1720_v4  ;;  %1514 = vmatpush3.bf16.msra.mxu1 %v2007_v16 }
  0x39   : > { %1540 = vmatprep.subr.bf16.mxu1 %v1814_v18 }
  0x3b   : > { %1520 = vmatpush3.bf16.msra.mxu0 %v1784_v8 }
  0x3c   : > { %1521 = vmatprep.subr.bf16.mxu0 %v1720_v4 }
  0x3f   : > { %1523 = vmatpush3.bf16.msra.mxu0 %v1812_v17 }
  0x40   : > { %1524 = vmatprep.subr.bf16.mxu0 %v1720_v4 }
  0x43   : > { %1526 = vmatpush3.bf16.msra.mxu0 %v1844_v28 }
  0x44   : > { %1527 = vmatprep.subr.bf16.mxu0 %v1720_v4 }
  0x47   : > { %1529 = vmatpush3.bf16.msra.mxu0 %v1866_v35 }
  0x48   : > { %1530 = vmatprep.subr.bf16.mxu0 %v1720_v4 }
  0x4b   : > { %1532 = vmatpush3.bf16.msra.mxu0 %v1878_v38 }
  0x4c   : > { %1533 = vmatprep.subr.bf16.mxu0 %v1720_v4 }
  0x4f   : > { %1535 = vmatpush3.bf16.msra.mxu0 %v1888_v41 }
  0x50   : > { %1536 = vmatprep.subr.bf16.mxu0 %v1720_v4 }
  0x53   : > { %1538 = vmatpush3.bf16.msra.mxu0 %v1898_v44 }
  0x54   : > { %1571 = vmatprep.subr.bf16.mxu0 %v1720_v4 }
 0x109   : > { %v291_v21 = vpop.f32.mrb[0].mxu0 }
 0x10a   : > { %v295_v22 = vadd.f32 %v291_v21, %v207_v20  ;;  %v1353_v24 = vpop.f32.mrb[1].mxu0 }
 0x10c   : > { %1695 = vtanh.f32 %v295_v22 }
 0x116   : > { %v1696_v25 = vpop.eup %1695 }
 0x117   : > { %404 = vmatmul.mubr.f32.vlgmr.msra.gmra.mrb[0].mxu1 %v1696_v25  ;;  %1387 = vmatmul.mubr.f32.vlgmr.msra.gmra.mrb[2].mxu0 %v1696_v25 }
 0x118   : > { %1573 = vmatpush3.bf16.msra.mxu0 %v1776_v5  ;;  %1542 = vmatpush3.bf16.msra.mxu1 %v1816_v19 }
 0x119   : > { %1574 = vmatprep.subr.bf16.mxu0 %v1720_v4  ;;  %1544 = vmatprep.subr.bf16.mxu1 %v1828_v23 }
 0x11a   : > { %1421 = vmatprep.mubr.msk.f32.mxu0 %vm1721_vm0, %v1722_v7 }
 0x11c   : > { %1576 = vmatpush3.bf16.msra.mxu0 %v1784_v8  ;;  %1546 = vmatpush3.bf16.msra.mxu1 %v1841_v27 }
 0x11d   : > { %1577 = vmatprep.subr.bf16.mxu0 %v1720_v4  ;;  %1548 = vmatprep.subr.bf16.mxu1 %v1847_v29 }
 0x120   : > { %1579 = vmatpush3.bf16.msra.mxu0 %v1812_v17  ;;  %1550 = vmatpush3.bf16.msra.mxu1 %v1863_v34 }
 0x121   : > { %1580 = vmatprep.subr.bf16.mxu0 %v1720_v4  ;;  %1552 = vmatprep.subr.bf16.mxu1 %v1927_v48 }
 0x124   : > { %1582 = vmatpush3.bf16.msra.mxu0 %v1844_v28  ;;  %1554 = vmatpush3.bf16.msra.mxu1 %v1935_v51 }
 0x125   : > { %1583 = vmatprep.subr.bf16.mxu0 %v1720_v4  ;;  %1556 = vmatprep.subr.bf16.mxu1 %v1945_v54 }
 0x128   : > { %1585 = vmatpush3.bf16.msra.mxu0 %v1866_v35  ;;  %1558 = vmatpush3.bf16.msra.mxu1 %v1953_v57 }
 0x129   : > { %1586 = vmatprep.subr.bf16.mxu0 %v1720_v4  ;;  %1560 = vmatprep.subr.bf16.mxu1 %v1963_v60 }
 0x12c   : > { %1588 = vmatpush3.bf16.msra.mxu0 %v1878_v38  ;;  %1562 = vmatpush3.bf16.msra.mxu1 %v1971_v63 }
 0x12d   : > { %1589 = vmatprep.subr.bf16.mxu0 %v1720_v4  ;;  %1564 = vmatprep.subr.bf16.mxu1 %v1984_v3 }
 0x130   : > { %1591 = vmatpush3.bf16.msra.mxu0 %v1888_v41  ;;  %1566 = vmatpush3.bf16.msra.mxu1 %v1995_v11 }
 0x131   : > { %1592 = vmatprep.subr.bf16.mxu0 %v1720_v4  ;;  %1568 = vmatprep.subr.bf16.mxu1 %v1997_v12 }
 0x134   : > { %1594 = vmatpush3.bf16.msra.mxu0 %v1898_v44  ;;  %1570 = vmatpush3.bf16.msra.mxu1 %v2007_v16 }
 0x135   : > { %1627 = vmatprep.subr.bf16.mxu0 %v1720_v4  ;;  %1596 = vmatprep.subr.bf16.mxu1 %v1814_v18 }
 0x1ea   : > { %v1160_v30 = vpop.f32.mrb[0].mxu1  ;;  %v497_v31 = vpop.f32.mrb[2].mxu0 }
 0x1eb   : > { %v501_v32 = vadd.f32 %v1100_v26, %v497_v31  ;;  %v1161_v36 = vpop.f32.mrb[1].mxu1  ;;  %v1388_v37 = vpop.f32.mrb[3].mxu0 }
 0x1ec   : > { %v1162_v39 = vadd.f32 %v1161_v36, %v1160_v30 }
 0x1ed   : > { %1697 = vtanh.f32 %v501_v32 }
 0x1ee   : > { %v406_v40 = vadd.f32 %v1162_v39, %v2051_v33 }
 0x1f0   : > { %1699 = vtanh.f32 %v406_v40 }
 0x1f7   : > { %v1698_v42 = vpop.eup %1697 }
 0x1f8   : > { %1422 = vmatmul.mubr.f32.vlgmr.msra.gmra.mrb[4].mxu0 %v1698_v42 }
 0x1f9   : > { %1629 = vmatpush3.bf16.msra.mxu0 %v1776_v5  ;;  %1456 = vmatprep.mubr.msk.f32.mxu0 %vm1721_vm0, %v1722_v7  ;;  %v1103_v5 = vld [vmem:[%s1759_s21 + $0x10] sm:$0xff] }
 0x1fa   : > { %v1700_v43 = vpop.eup %1699  ;;  %1630 = vmatprep.subr.bf16.mxu0 %v1720_v4 }
 0x1fb   : > { %411 = vst [vmem:[%s1764_s24] sm:$0xff] %v1700_v43  ;;  %609 = vmatprep.mubr.f32.mxu1 %v1700_v43 }
 0x1fc   : > { %610 = vmatmul.mubr.f32.vlgmr.msra.gmra.mrb[2].mxu1 %v1698_v42 }
 0x1fd   : > { %1632 = vmatpush3.bf16.msra.mxu0 %v1784_v8  ;;  %1598 = vmatpush3.bf16.msra.mxu1 %v1816_v19 }
 0x1fe   : > { %1633 = vmatprep.subr.bf16.mxu0 %v1720_v4  ;;  %1600 = vmatprep.subr.bf16.mxu1 %v1828_v23 }
 0x201   : > { %1635 = vmatpush3.bf16.msra.mxu0 %v1812_v17  ;;  %1602 = vmatpush3.bf16.msra.mxu1 %v1841_v27 }
 0x202   : > { %1636 = vmatprep.subr.bf16.mxu0 %v1720_v4  ;;  %1604 = vmatprep.subr.bf16.mxu1 %v1847_v29 }
 0x205   : > { %1638 = vmatpush3.bf16.msra.mxu0 %v1844_v28  ;;  %1606 = vmatpush3.bf16.msra.mxu1 %v1863_v34 }
 0x206   : > { %1639 = vmatprep.subr.bf16.mxu0 %v1720_v4  ;;  %1608 = vmatprep.subr.bf16.mxu1 %v1927_v48 }
 0x209   : > { %1641 = vmatpush3.bf16.msra.mxu0 %v1866_v35  ;;  %1610 = vmatpush3.bf16.msra.mxu1 %v1935_v51 }
 0x20a   : > { %1642 = vmatprep.subr.bf16.mxu0 %v1720_v4  ;;  %1612 = vmatprep.subr.bf16.mxu1 %v1945_v54 }
 0x20d   : > { %1644 = vmatpush3.bf16.msra.mxu0 %v1878_v38  ;;  %1614 = vmatpush3.bf16.msra.mxu1 %v1953_v57 }
 0x20e   : > { %1645 = vmatprep.subr.bf16.mxu0 %v1720_v4  ;;  %1616 = vmatprep.subr.bf16.mxu1 %v1963_v60 }
 0x211   : > { %1647 = vmatpush3.bf16.msra.mxu0 %v1888_v41  ;;  %1618 = vmatpush3.bf16.msra.mxu1 %v1971_v63 }
 0x212   : > { %1648 = vmatprep.subr.bf16.mxu0 %v1720_v4  ;;  %1620 = vmatprep.subr.bf16.mxu1 %v1984_v3 }
 0x215   : > { %1650 = vmatpush3.bf16.msra.mxu0 %v1898_v44  ;;  %1622 = vmatpush3.bf16.msra.mxu1 %v1995_v11 }
 0x216   : > { %1624 = vmatprep.subr.bf16.mxu1 %v1997_v12 }
 0x219   : > { %1626 = vmatpush3.bf16.msra.mxu1 %v2007_v16 }
 0x21a   : > { %1652 = vmatprep.subr.bf16.mxu1 %v1814_v18  ;;  %v1106_v18 = vld [vmem:[%s1759_s21 + $0x18] sm:$0xff] }
 0x2cb   : > { %v704_v7 = vpop.f32.mrb[4].mxu0 }
 0x2cc   : > { %v708_v8 = vadd.f32 %v1103_v5, %v704_v7  ;;  %v1423_v17 = vpop.f32.mrb[5].mxu0 }
 0x2ce   : > { %1701 = vtanh.f32 %v708_v8 }
 0x2cf   : > { %v1212_v28 = vpop.f32.mrb[2].mxu1 }
 0x2d0   : > { %v1213_v4 = vpop.f32.mrb[3].mxu1 }
 0x2d1   : > { %v1214_v35 = vadd.f32 %v1213_v4, %v1212_v28 }
 0x2d3   : > { %v612_v38 = vadd.f32 %v1214_v35, %v2051_v33 }
 0x2d5   : > { %1703 = vtanh.f32 %v612_v38 }
 0x2d8   : > { %v1702_v41 = vpop.eup %1701 }
 0x2d9   : > { %1457 = vmatmul.mubr.f32.vlgmr.msra.gmra.mrb[6].mxu0 %v1702_v41 }
 0x2df   : > { %v1704_v44 = vpop.eup %1703 }
 0x2e0   : > { %1102 = vst [vmem:[%s1764_s24 + $0x8] sm:$0xff] %v1704_v44  ;;  %816 = vmatprep.mubr.f32.mxu1 %v1704_v44 }
 0x2e1   : > { %817 = vmatmul.mubr.f32.vlgmr.msra.gmra.mrb[4].mxu1 %v1702_v41 }
 0x2e2   : > { %1654 = vmatpush3.bf16.msra.mxu1 %v1816_v19 }
 0x2e3   : > { %1656 = vmatprep.subr.bf16.mxu1 %v1828_v23 }
 0x2e6   : > { %1658 = vmatpush3.bf16.msra.mxu1 %v1841_v27 }
 0x2e7   : > { %1660 = vmatprep.subr.bf16.mxu1 %v1847_v29 }
 0x2ea   : > { %1662 = vmatpush3.bf16.msra.mxu1 %v1863_v34 }
 0x2eb   : > { %1664 = vmatprep.subr.bf16.mxu1 %v1927_v48 }
 0x2ee   : > { %1666 = vmatpush3.bf16.msra.mxu1 %v1935_v51 }
 0x2ef   : > { %1668 = vmatprep.subr.bf16.mxu1 %v1945_v54 }
 0x2f2   : > { %1670 = vmatpush3.bf16.msra.mxu1 %v1953_v57 }
 0x2f3   : > { %1672 = vmatprep.subr.bf16.mxu1 %v1963_v60 }
 0x2f6   : > { %1674 = vmatpush3.bf16.msra.mxu1 %v1971_v63 }
 0x2f7   : > { %1676 = vmatprep.subr.bf16.mxu1 %v1984_v3 }
 0x2fa   : > { %1678 = vmatpush3.bf16.msra.mxu1 %v1995_v11 }
 0x2fb   : > { %1680 = vmatprep.subr.bf16.mxu1 %v1997_v12 }
 0x2fe   : > { %1682 = vmatpush3.bf16.msra.mxu1 %v2007_v16 }
 0x3ac   : > { %v911_v19 = vpop.f32.mrb[6].mxu0 }
 0x3ad   : > { %v915_v23 = vadd.f32 %v1106_v18, %v911_v19  ;;  %v1458_v27 = vpop.f32.mrb[7].mxu0 }
 0x3af   : > { %1705 = vtanh.f32 %v915_v23 }
 0x3b4   : > { %v1264_v29 = vpop.f32.mrb[4].mxu1 }
 0x3b5   : > { %v1265_v34 = vpop.f32.mrb[5].mxu1 }
 0x3b6   : > { %v1266_v45 = vadd.f32 %v1265_v34, %v1264_v29 }
 0x3b8   : > { %v819_v46 = vadd.f32 %v1266_v45, %v2051_v33 }
 0x3b9   : > { %v1706_v47 = vpop.eup %1705 }
 0x3ba   : > { %917 = vst [vmem:[#allocation2] sm:$0xff] %v1706_v47  ;;  %1707 = vtanh.f32 %v819_v46 }
 0x3c4   : > { %v1708_v48 = vpop.eup %1707 }
 0x3c5   : > { %1105 = vst [vmem:[%s1764_s24 + $0x10] sm:$0xff] %v1708_v48  ;;  %1023 = vmatprep.mubr.f32.mxu1 %v1708_v48 }
 0x3c6   : > { %1024 = vmatmul.mubr.f32.vlgmr.msra.gmra.mrb[6].mxu1 %v1706_v47 }
 0x499   : > { %v1316_v49 = vpop.f32.mrb[6].mxu1 }
 0x49a   : > { %v1317_v50 = vpop.f32.mrb[7].mxu1 }
 0x49b   : > { %v1318_v51 = vadd.f32 %v1317_v50, %v1316_v49 }
 0x49d   : > { %v1026_v52 = vadd.f32 %v1318_v51, %v2051_v33 }
 0x49f   : > { %1709 = vtanh.f32 %v1026_v52 }
 0x4a9   : > { %v1710_v53 = vpop.eup %1709 }
 0x4aa   : > { %1030 = vst [vmem:[#allocation2 + $0x8] sm:$0xff] %v1710_v53  ;;  %1108 = vst [vmem:[%s1764_s24 + $0x18] sm:$0xff] %v1710_v53 }
 0x4ab PF: > { %s14_s15 = sadd.s32 1, %s1717_s15  }
 0x4ac   : > { %p11_p5 = scmp.ge.s32.totalorder %s14_s15, 4  }
 0x4ae   :  { %13 = sbr.rel (!%p11_p5) target bundleno = 1 (0x1), region = 76 }

</bundles_post_ra>
